<compile_context>
chip_gen: v6e
topology: v6e:2x2x1
jax: 0.10.0
libtpu: 0.0.40
codegen_flags: <defaults>
</compile_context>

<pallas_src>
import functools

import jax
import jax.numpy as jnp
from jax.experimental import pallas as pl
from jax.experimental.pallas import tpu as pltpu

_LANES = 128
_TARGET_TILE_ROWS = 4096  # 4096 x 128 x 4B = 2 MiB f32 block


def _aq_kernel(scalars_ref, x_ref, o_ref):
    # scalars_ref (SMEM): [alpha, scale, inv_scale], all f32.
    alpha = scalars_ref[0]
    scale = scalars_ref[1]
    inv_scale = scalars_ref[2]
    x = x_ref[...]
    # Clamp above by alpha (matches torch.where(x < alpha, x, alpha) incl. NaN).
    x = jnp.where(x < alpha, x, alpha)
    # RoundQuant forward: round(x * scale) / scale, with the divide replaced by
    # a multiply with the precomputed scalar inverse (<= 1 ulp difference).
    o_ref[...] = (jnp.round(x * scale) * inv_scale).astype(o_ref.dtype)


def aq_forward(x, alpha, abit):
    """AQ.forward for NCHW input `x`, scalar `alpha`, static int `abit`."""
    if x.shape[1] <= 3:
        # PyTorch module returns the input unchanged when channel dim <= 3.
        return x

    orig_shape = x.shape
    orig_dtype = x.dtype
    total = int(x.size)

    # Flatten to (padded_rows, 128) with near-equal blocks of <= TARGET rows.
    rows = -(-total // _LANES)  # ceil
    num_blocks = max(1, -(-rows // _TARGET_TILE_ROWS))
    tile_rows = ((-(-rows // num_blocks) + 7) // 8) * 8  # ceil to sublane mult of 8
    padded_rows = num_blocks * tile_rows
    padded_total = padded_rows * _LANES

    x_flat = x.reshape(-1)
    if padded_total != total:
        x_flat = jnp.pad(x_flat, (0, padded_total - total))
    x2 = x_flat.reshape(padded_rows, _LANES)

    # Hoist all scalar math out of the kernel; pass via SMEM.
    alpha_f = jnp.asarray(alpha, jnp.float32)
    n_lv = jnp.float32(2 ** abit - 1)
    scale = n_lv / alpha_f
    inv_scale = alpha_f / n_lv
    scalars = jnp.stack([alpha_f, scale, inv_scale]).astype(jnp.float32)

    out2 = pl.pallas_call(
        _aq_kernel,
        out_shape=jax.ShapeDtypeStruct((padded_rows, _LANES), orig_dtype),
        grid_spec=pltpu.PrefetchScalarGridSpec(
            num_scalar_prefetch=0,
            grid=(num_blocks,),
            in_specs=[
                pl.BlockSpec(memory_space=pltpu.MemorySpace.SMEM),       # scalars
                pl.BlockSpec((tile_rows, _LANES), lambda i: (i, 0)),     # x tile
            ],
            out_specs=pl.BlockSpec((tile_rows, _LANES), lambda i: (i, 0)),
        ),
        compiler_params=pltpu.CompilerParams(
            dimension_semantics=("parallel",),       # shards grid across v7x TCs
            vmem_limit_bytes=32 * 1024 * 1024,       # explicit; 8 MiB buffers fit everywhere
        ),
    )(scalars, x2)

    out_flat = out2.reshape(-1)
    if padded_total != total:
        out_flat = out_flat[:total]
    return out_flat.reshape(orig_shape)


def aq_reference(x, alpha, abit):
    """Pure-JAX reference matching the PyTorch forward exactly."""
    if x.shape[1] <= 3:
        return x
    xc = jnp.where(x < alpha, x, alpha)
    scale = (2 ** abit - 1) / alpha
    return jnp.round(xc * scale) / scale


if __name__ == "__main__":
    # Deterministic parameter init (AQ.__init__: alpha = Tensor([alpha_init]))
    abit = 4
    alpha_init = 10.0
    alpha = jnp.float32(alpha_init)

    key = jax.random.PRNGKey(0)

    # Quantization path: C=4 > 3
    x = jax.random.normal(key, (2, 4, 16, 16), dtype=jnp.float32) * 5.0
    out = aq_forward(x, alpha, abit)
    out = jax.block_until_ready(out)
    ref = aq_reference(x, alpha, abit)
    assert out.shape == x.shape and out.dtype == x.dtype
    assert jnp.allclose(out, ref, atol=1e-5, rtol=1e-5), "mismatch vs reference"

    # Passthrough path: C=3 <= 3
    x3 = jax.random.normal(key, (2, 3, 16, 16), dtype=jnp.float32)
    out3 = jax.block_until_ready(aq_forward(x3, alpha, abit))
    assert jnp.array_equal(out3, x3), "passthrough path mismatch"

    # TODO(synk): RoundQuant backward (straight-through estimator) is autograd-only;
    # only the forward pass is implemented here.
    print("KERNEL_OK")
</pallas_src>

<mosaic_0001>
module attributes {stable_mosaic.version = 11 : i64} {
  func.func @_aq_kernel(%arg0: i32, %arg1: memref<3xf32, #tpu.memory_space<smem>>, %arg2: memref<16x128xf32, #tpu.memory_space<vmem>>, %arg3: memref<16x128xf32, #tpu.memory_space<vmem>>) attributes {dimension_semantics = [#tpu.dimension_semantics<parallel>], iteration_bounds = array<i64: 1>, scalar_prefetch = 0 : i64, scratch_operands = 0 : i64, tpu.core_type = #tpu.core_type<tc>, window_params = [{transform_indices = @transform_0, window_bounds = array<i64: 3>}, {transform_indices = @transform_1, window_bounds = array<i64: 16, 128>}, {transform_indices = @transform_2, window_bounds = array<i64: 16, 128>}]} {
    %c0 = arith.constant 0 : index
    %0 = memref.load %arg1[%c0] : memref<3xf32, #tpu.memory_space<smem>>
    %c1 = arith.constant 1 : index
    %1 = memref.load %arg1[%c1] : memref<3xf32, #tpu.memory_space<smem>>
    %c2 = arith.constant 2 : index
    %2 = memref.load %arg1[%c2] : memref<3xf32, #tpu.memory_space<smem>>
    %c0_0 = arith.constant 0 : index
    %c0_1 = arith.constant 0 : index
    %3 = vector.load %arg2[%c0_0, %c0_1] : memref<16x128xf32, #tpu.memory_space<vmem>>, vector<16x128xf32>
    %4 = vector.broadcast %0 : f32 to vector<16x128xf32>
    %5 = arith.cmpf olt, %3, %4 : vector<16x128xf32>
    %6 = vector.broadcast %0 : f32 to vector<16x128xf32>
    %7 = arith.select %5, %3, %6 : vector<16x128xi1>, vector<16x128xf32>
    %8 = vector.broadcast %1 : f32 to vector<16x128xf32>
    %9 = arith.mulf %7, %8 : vector<16x128xf32>
    %10 = math.roundeven %9 : vector<16x128xf32>
    %11 = vector.broadcast %2 : f32 to vector<16x128xf32>
    %12 = arith.mulf %10, %11 : vector<16x128xf32>
    %c0_2 = arith.constant 0 : index
    %c0_3 = arith.constant 0 : index
    %13 = vector.load %arg3[%c0_2, %c0_3] : memref<16x128xf32, #tpu.memory_space<vmem>>, vector<16x128xf32>
    tpu.vector_store %arg3[%c0_2, %c0_3], %12 {strides = array<i32>} : memref<16x128xf32, #tpu.memory_space<vmem>>, vector<16x128xf32>,
    return
  }
  func.func @transform_0(%arg0: i32) -> i32 {
    %c0_i32 = arith.constant 0 : i32
    %c0_i32_0 = arith.constant 0 : i32
    return %c0_i32 : i32
  }
  func.func @transform_1(%arg0: i32) -> (i32, i32) {
    %c0_i32 = arith.constant 0 : i32
    %c0_i32_0 = arith.constant 0 : i32
    return %arg0, %c0_i32 : i32, i32
  }
  func.func @transform_2(%arg0: i32) -> (i32, i32) {
    %c0_i32 = arith.constant 0 : i32
    %c0_i32_0 = arith.constant 0 : i32
    return %arg0, %c0_i32 : i32, i32
  }
}

</mosaic_0001>

<bundles_post_ra>
// kernel: tpu_custom_call.1
= control target key start
LH: loop header
LB: loop body
LE: loop exit
PB: predicated region body
PF: predicated region fallthrough
CT: control target
= control target key end

     0   :  { %7 = vsyncpa [#allocation5], 0  ;;  %s187_s0 = inlined_call_operand.hbm [shape: f32[3], index: 0, kind: input, shape index: {}]   ;;  %s188_s1 = inlined_call_operand.hbm [shape: f32[16,128], index: 1, kind: input, shape index: {}]   ;;  %s189_s2 = inlined_call_operand.hbm [shape: f32[16,128], index: 2, kind: output, shape index: {}]  }
   0x1   :  { %8 = vsyncpa [#allocation3], 0 }
   0x2   :  { %9 = vsyncpa [#allocation4], 0  ;;  %s152_s9 = smov [#allocation2]   ;;  %s153_s12 = smov [#allocation6]  }
   0x3   :  { %17 = dma.hbm_to_smem %s187_s0, 16, %s152_s9, [#allocation5]  }
   0x4   :  { %s23_s13 = sshll.u32 %s153_s12, 4  ;;  %s24_s13 = int_to_ptr.vmem [resolvable:$true] %s23_s13 }
   0x5   :  { %s114_s14 = scalar_lea.vmem %s24_s13, 256  ;;  %p119_p1 = scmp.lt.s32.totalorder %s24_s13, %s24_s13 }
   0x6   :  { %p115_p0 = scmp.ne.s32.totalorder %s24_s13, %s114_s14  ;;  %p120_p2 = scmp.lt.s32.totalorder %s114_s14, %s114_s14 }
   0x8   :  { %p121_p3 = por %p120_p2, %p119_p1 }
   0xa   :  { %p122_p4 = pnand %p121_p3, %p115_p0 }
   0xc   :  { %125 = shalt.err (!%p122_p4)
}
   0xd   :  { %s154_s15 = smov 128   ;;  %s155_s16 = smov 8  }
   0xe   :  { %29 = dma.hbm_to_vmem [thread:$0]  %s188_s1, 256, %s24_s13, [#allocation3], %s154_s15, %s154_s15, %s155_s16  }
   0xf   :  { %146 = dma.done.wait [#allocation5], 16  }
  0x10   :  { %147 = vsyncadd [#allocation5], 4294967280 }
  0x11   :  { %148 = dma.done.wait [#allocation3], 256  }
  0x12   :  { %149 = vsyncadd [#allocation3], 4294967040 }
  0x13   :  { %36 = sfence }
  0x14   :  { %s37_s0 = sld [smem:[#allocation2]]  ;;  %v40_v0 = vld [vmem:[#allocation6] sm:$0xff]  ;;  %v41_v1 = vld [vmem:[#allocation6 + $0x8] sm:$0xff]  ;;  %s156_s1 = smov [#allocation7]  }
  0x15   :  { %s75_s19 = sld [smem:[#allocation2 + $0x1]]  ;;  %s62_s21 = sshll.u32 %s156_s1, 4  ;;  %s63_s21 = int_to_ptr.vmem [resolvable:$true] %s62_s21 }
  0x16   :  { %s76_s20 = sld [smem:[#allocation2 + $0x2]]  ;;  %s126_s22 = scalar_lea.vmem %s63_s21, 256 }
  0x17   :  { %p127_p5 = scmp.ne.s32.totalorder %s63_s21, %s126_s22  ;;  %p131_p6 = scmp.lt.s32.totalorder %s63_s21, %s63_s21 }
  0x18   :  { %p132_p7 = scmp.lt.s32.totalorder %s126_s22, %s126_s22 }
  0x1a   :  { %v42_v2 = vstv %s37_s0  ;;  %p133_p8 = por %p132_p7, %p131_p6 }
  0x1b   :  { %vm43_vm0 = vcmp.lt.f32.partialorder %v40_v0, %v42_v2  ;;  %v47_v3 = vstv %s75_s19  ;;  %vm44_vm1 = vcmp.lt.f32.partialorder %v41_v1, %v42_v2 }
  0x1c   :  { %v45_v4 = vsel %vm43_vm0, %v40_v0, %v42_v2  ;;  %v46_v5 = vsel %vm44_vm1, %v41_v1, %v42_v2  ;;  %v52_v19 = vstv %s76_s20  ;;  %p134_p9 = pnand %p133_p8, %p127_p5 }
  0x1d   :  { %v48_v6 = vmul.f32 %v47_v3, %v45_v4  ;;  %v49_v7 = vmul.f32 %v47_v3, %v46_v5 }
  0x1f   :  { %v79_v8 = vcvt.f32.s32 %v48_v6  ;;  %v77_v9 = vand.u32 2147483647, %v48_v6  ;;  %v87_v10 = vcvt.f32.s32 %v49_v7  ;;  %v82_v12 = vand.u32 2147483648, %v48_v6 }
  0x20   :  { %v85_v13 = vand.u32 2147483647, %v49_v7  ;;  %v90_v15 = vand.u32 2147483648, %v49_v7 }
  0x21   :  { %v80_v11 = vcvt.s32.f32 %v79_v8  ;;  %v88_v14 = vcvt.s32.f32 %v87_v10  ;;  %vm78_vm2 = vcmp.lt.f32.partialorder %v77_v9, 8388608.0 }
  0x22   :  { %vm86_vm3 = vcmp.lt.f32.partialorder %v85_v13, 8388608.0 }
  0x23   :  { %v81_v16 = vand.u32 2147483647, %v80_v11  ;;  %v89_v17 = vand.u32 2147483647, %v88_v14 }
  0x25   :  { %v83_v18 = vor.u32 %v82_v12, %v81_v16  ;;  %v91_v20 = vor.u32 %v90_v15, %v89_v17 }
  0x27   :  { %v84_v21 = vsel %vm78_vm2, %v83_v18, %v48_v6  ;;  %v92_v23 = vsel %vm86_vm3, %v91_v20, %v49_v7 }
  0x28   :  { %v53_v22 = vmul.f32 %v84_v21, %v52_v19  ;;  %v54_v24 = vmul.f32 %v92_v23, %v52_v19 }
  0x2a   :  { %55 = vst [vmem:[#allocation7] sm:$0xff] %v53_v22  ;;  %56 = vst [vmem:[#allocation7 + $0x8] sm:$0xff] %v54_v24 }
  0x2b   :  { %137 = shalt.err (!%p134_p9)
}
  0x2c   :  { %68 = dma.vmem_to_hbm [thread:$0]  %s63_s21, 256, %s189_s2, [#allocation4], %s154_s15, %s154_s15, %s155_s16  }
  0x2d   :  { %150 = dma.done.wait [#allocation4], 256  }
  0x2e   :  { %151 = vsyncadd [#allocation4], 4294967040 }
  0x2f   :  { %72 = vsyncpa [#allocation3], 1 }
  0x30   :  { %73 = vsyncpa [#allocation4], 1 }
  0x31   :  { %74 = vsyncpa [#allocation5], 1 }

</bundles_post_ra>
